<compile_context>
chip_gen: v5e
topology: v5e:2x2
jax: 0.10.0
libtpu: 0.0.40
codegen_flags: <defaults>
</compile_context>

<pallas_src>
import jax
import jax.numpy as jnp
from jax.experimental import pallas as pl
from jax.experimental.pallas import tpu as pltpu


# ----------------------------------------------------------------------------
# Fused kernel: q-proj + block-diagonal attention + output-proj.
# One grid step = (batch b, token tile n); everything in (C, N) layout.
# ----------------------------------------------------------------------------
def _fused_attn_kernel(x_ref, k_ref, v_ref, ones_ref, wq_ref, bq_ref,
                       wp_ref, bp_ref, o_ref):
    """Refs (per grid step):

    x_ref   : (1, C, TN)      tokens, channels on sublanes / tokens on lanes
    k_ref   : (1, nh*Lg, C)   block-diagonal K (off-diagonal head blocks = 0)
    v_ref   : (1, C, nh*Lg)   block-diagonal V
    ones_ref: (nh*Lg, nh*Lg)  block-diag of ones (per-head softmax-sum bcast)
    wq_ref  : (C, C)          q weight (softmax scale folded in)
    bq_ref  : (C, 1)          q bias (scale folded in), f32
    wp_ref  : (C, C)          output-projection weight
    bp_ref  : (C, 1)          output-projection bias, f32
    o_ref   : (1, C, TN)      output tokens (lane-dense store along N)
    """
    x = x_ref[0]                                              # (C, TN)

    # q projection on the MXU; scale already folded into wq/bq.
    q_t = jnp.dot(wq_ref[...], x, preferred_element_type=jnp.float32)
    q_t = q_t + bq_ref[...]                                   # (C, TN) f32

    # All heads' scores in ONE MXU op via block-diagonal K: (nh*Lg, TN).
    s = jnp.dot(k_ref[0], q_t.astype(k_ref.dtype),
                preferred_element_type=jnp.float32)

    # Per-head softmax along each head's Lg rows.  Subtracting the global
    # per-column max is mathematically equivalent (it cancels) and avoids a
    # segmented max; the per-head denominator is broadcast back with a
    # block-diagonal ones matmul (MXU) instead of reshape/reduce relayouts.
    m = jnp.max(s, axis=0, keepdims=True)                     # (1, TN)
    p = jnp.exp(s - m)                                        # (nh*Lg, TN) f32
    denom = jnp.dot(ones_ref[...], p, preferred_element_type=jnp.float32)
    p = p * pl.reciprocal(denom, approx=False)                # exact

    # attn @ v in ONE MXU op via block-diagonal V: (C, TN).
    o = jnp.dot(v_ref[0], p.astype(v_ref.dtype),
                preferred_element_type=jnp.float32)

    # Output projection + single lane-dense (C, TN) store.
    y = jnp.dot(wp_ref[...], o.astype(wp_ref.dtype),
                preferred_element_type=jnp.float32) + bp_ref[...]
    o_ref[0] = y.astype(o_ref.dtype)


def _pick_token_tile(n):
    """Largest token-tile (lane dim) from {1024,512,256,128} dividing n."""
    for t in (1024, 512, 256, 128):
        if n >= t and n % t == 0:
            return t
    return n


# ----------------------------------------------------------------------------
# Forward wrapper (semantics of Attention_cross.forward)
# ----------------------------------------------------------------------------
def attention_cross_forward(x, guidance, params, num_heads, compute_dtype=None):
    """x: (B, C, H, W) NCHW; guidance: (B, L, text_dim); returns (B, C, H, W).

    compute_dtype: optional matmul-operand dtype (e.g. jnp.bfloat16 on
    v6e/v7x); accumulation and softmax math stay in f32.
    """
    B, C, H, W = x.shape
    hd = C // num_heads
    scale = hd ** (-0.5)
    N = H * W
    cd = x.dtype if compute_dtype is None else compute_dtype

    # (C, N) layout: the NCHW input is already channels-major -> no wrapper
    # transposes, and the token axis is the lane axis inside the kernel.
    x_cn = x.reshape(B, C, N).astype(cd)

    # Fold the softmax scale into the q projection (trace-time, once).
    wq_s = (params["wq"] * scale).astype(cd)                        # (C, C)
    bq_s = (params["bq"] * scale).reshape(C, 1).astype(jnp.float32)
    wp = params["wproj"].astype(cd)                                 # (C, C)
    bp = params["bproj"].reshape(C, 1).astype(jnp.float32)

    # kv projection is tiny -- keep it in XLA, then build BLOCK-DIAGONAL K/V:
    #   K_bd[b, h*Lg + l, g*hd + d] = k[b, h, l, d] * delta(h, g)
    #   V_bd[b, g*hd + d, h*Lg + l] = v[b, h, l, d] * delta(h, g)
    # PyTorch folds the guidance sequence across heads: Lg = L // num_heads.
    kv = guidance @ jnp.transpose(params["wkv"]) + params["bkv"]    # (B, L, 2*hd)
    kv = kv.reshape(B, -1, 2, num_heads, hd)                        # (B, Lg, 2, nh, hd)
    Lg = kv.shape[1]
    k_bhld = jnp.transpose(kv[:, :, 0], (0, 2, 1, 3))               # (B, nh, Lg, hd)
    v_bhld = jnp.transpose(kv[:, :, 1], (0, 2, 1, 3))
    eye_h = jnp.eye(num_heads, dtype=kv.dtype)
    nL = num_heads * Lg
    k_bd = jnp.einsum("bhld,hg->bhlgd", k_bhld, eye_h).reshape(B, nL, C).astype(cd)
    v_bd = jnp.einsum("bhld,hg->bgdhl", v_bhld, eye_h).reshape(B, C, nL).astype(cd)
    # Block-diag of ones broadcasts the per-head softmax denominator (f32).
    ones_bd = jnp.kron(jnp.eye(num_heads, dtype=jnp.float32),
                       jnp.ones((Lg, Lg), dtype=jnp.float32))       # (nL, nL)

    # Token-tiled parallel grid. Weights / K / V keep constant index_maps so
    # they stay VMEM-resident while the x / out tiles stream through.
    TN = _pick_token_tile(N)
    grid = (B, N // TN)

    itemsize = jnp.dtype(cd).itemsize
    cost = pl.CostEstimate(
        flops=2 * B * N * (2 * C * C + 2 * nL * C + nL * nL),
        transcendentals=B * N * nL,
        bytes_accessed=(2 * B * N * C * itemsize                    # x + out
                        + 2 * B * nL * C * itemsize                 # K_bd + V_bd
                        + 2 * C * C * itemsize + nL * nL * 4))      # weights

    out_cn = pl.pallas_call(
        _fused_attn_kernel,
        out_shape=jax.ShapeDtypeStruct((B, C, N), x.dtype),
        grid=grid,
        in_specs=[
            pl.BlockSpec((1, C, TN), lambda b, n: (b, 0, n)),     # x
            pl.BlockSpec((1, nL, C), lambda b, n: (b, 0, 0)),     # K_bd
            pl.BlockSpec((1, C, nL), lambda b, n: (b, 0, 0)),     # V_bd
            pl.BlockSpec((nL, nL), lambda b, n: (0, 0)),          # ones_bd
            pl.BlockSpec((C, C), lambda b, n: (0, 0)),            # wq
            pl.BlockSpec((C, 1), lambda b, n: (0, 0)),            # bq
            pl.BlockSpec((C, C), lambda b, n: (0, 0)),            # wproj
            pl.BlockSpec((C, 1), lambda b, n: (0, 0)),            # bproj
        ],
        out_specs=pl.BlockSpec((1, C, TN), lambda b, n: (b, 0, n)),
        compiler_params=pltpu.CompilerParams(
            dimension_semantics=("parallel", "parallel")),
        cost_estimate=cost,
    )(x_cn, k_bd, v_bd, ones_bd, wq_s, bq_s, wp, bp)

    # attn_drop / proj_drop are identity (p = 0.0); NCHW restore is a view.
    return out_cn.reshape(B, C, H, W)


# ----------------------------------------------------------------------------
# Pure-JAX reference (correctness check)
# ----------------------------------------------------------------------------
def _reference(x, guidance, params, num_heads):
    B, C, H, W = x.shape
    hd = C // num_heads
    scale = hd ** (-0.5)
    N = H * W
    xt = jnp.transpose(x.reshape(B, C, N), (0, 2, 1))
    q = xt @ params["wq"].T + params["bq"]
    q = jnp.transpose(q.reshape(B, N, num_heads, hd), (0, 2, 1, 3))
    kv = guidance @ params["wkv"].T + params["bkv"]
    kv = jnp.transpose(kv.reshape(B, -1, 2, num_heads, hd), (2, 0, 3, 1, 4))
    k, v = kv[0], kv[1]
    attn = jnp.einsum("bhnd,bhld->bhnl", q, k) * scale
    attn = jax.nn.softmax(attn, axis=-1)
    o = jnp.einsum("bhnl,bhld->bhnd", attn, v)
    o = jnp.transpose(o, (0, 2, 1, 3)).reshape(B, N, C)
    o = o @ params["wproj"].T + params["bproj"]
    return jnp.transpose(o, (0, 2, 1)).reshape(B, C, H, W)


# ----------------------------------------------------------------------------
# Main
# ----------------------------------------------------------------------------
if __name__ == "__main__":
    B = 2
    dim = 32          # C
    text_dim = 16
    num_heads = 8
    head_dim = dim // num_heads
    H = W = 8
    L = 16            # guidance length (divisible by num_heads)

    key = jax.random.PRNGKey(0)
    k_x, k_g, k_wq, k_bq, k_wkv, k_bkv, k_wp, k_bp = jax.random.split(key, 8)

    x = jax.random.normal(k_x, (B, dim, H, W), dtype=jnp.float32)
    guidance = jax.random.normal(k_g, (B, L, text_dim), dtype=jnp.float32)

    params = {
        # nn.Linear(dim, dim)
        "wq": 0.05 * jax.random.normal(k_wq, (dim, dim), dtype=jnp.float32),
        "bq": 0.05 * jax.random.normal(k_bq, (dim,), dtype=jnp.float32),
        # nn.Linear(text_dim, 2 * dim // num_heads)
        "wkv": 0.05 * jax.random.normal(k_wkv, (2 * head_dim, text_dim), dtype=jnp.float32),
        "bkv": 0.05 * jax.random.normal(k_bkv, (2 * head_dim,), dtype=jnp.float32),
        # nn.Linear(dim, dim)
        "wproj": 0.05 * jax.random.normal(k_wp, (dim, dim), dtype=jnp.float32),
        "bproj": 0.05 * jax.random.normal(k_bp, (dim,), dtype=jnp.float32),
    }

    fwd = jax.jit(attention_cross_forward,
                  static_argnames=("num_heads", "compute_dtype"))
    out = fwd(x, guidance, params, num_heads=num_heads)
    out = jax.block_until_ready(out)

    ref = _reference(x, guidance, params, num_heads)
    assert out.shape == (B, dim, H, W)
    assert jnp.allclose(out, ref, atol=1e-4, rtol=1e-4), \
        float(jnp.max(jnp.abs(out - ref)))

    print("KERNEL_OK")
</pallas_src>

<mosaic_0001>
module attributes {stable_mosaic.version = 11 : i64} {
  func.func @_fused_attn_kernel(%arg0: i32, %arg1: i32, %arg2: memref<1x32x64xf32, #tpu.memory_space<vmem>>, %arg3: memref<1x16x32xf32, #tpu.memory_space<vmem>>, %arg4: memref<1x32x16xf32, #tpu.memory_space<vmem>>, %arg5: memref<16x16xf32, #tpu.memory_space<vmem>>, %arg6: memref<32x32xf32, #tpu.memory_space<vmem>>, %arg7: memref<32x1xf32, #tpu.memory_space<vmem>>, %arg8: memref<32x32xf32, #tpu.memory_space<vmem>>, %arg9: memref<32x1xf32, #tpu.memory_space<vmem>>, %arg10: memref<1x32x64xf32, #tpu.memory_space<vmem>>) attributes {dimension_semantics = [#tpu.dimension_semantics<parallel>, #tpu.dimension_semantics<parallel>], iteration_bounds = array<i64: 2, 1>, scalar_prefetch = 0 : i64, scratch_operands = 0 : i64, tpu.core_type = #tpu.core_type<tc>, window_params = [{transform_indices = @transform_0, window_bounds = array<i64: 1, 32, 64>}, {transform_indices = @transform_1, window_bounds = array<i64: 1, 16, 32>}, {transform_indices = @transform_2, window_bounds = array<i64: 1, 32, 16>}, {pipeline_mode = #tpu.pipeline_mode<synchronous>, transform_indices = @transform_3, window_bounds = array<i64: 16, 16>}, {pipeline_mode = #tpu.pipeline_mode<synchronous>, transform_indices = @transform_4, window_bounds = array<i64: 32, 32>}, {pipeline_mode = #tpu.pipeline_mode<synchronous>, transform_indices = @transform_5, window_bounds = array<i64: 32, 1>}, {pipeline_mode = #tpu.pipeline_mode<synchronous>, transform_indices = @transform_6, window_bounds = array<i64: 32, 32>}, {pipeline_mode = #tpu.pipeline_mode<synchronous>, transform_indices = @transform_7, window_bounds = array<i64: 32, 1>}, {transform_indices = @transform_8, window_bounds = array<i64: 1, 32, 64>}]} {
    %c0 = arith.constant 0 : index
    %c0_0 = arith.constant 0 : index
    %c0_1 = arith.constant 0 : index
    %0 = vector.load %arg2[%c0, %c0_0, %c0_1] : memref<1x32x64xf32, #tpu.memory_space<vmem>>, vector<1x32x64xf32>
    %1 = vector.shape_cast %0 : vector<1x32x64xf32> to vector<32x64xf32>
    %c0_2 = arith.constant 0 : index
    %c0_3 = arith.constant 0 : index
    %2 = vector.load %arg6[%c0_2, %c0_3] : memref<32x32xf32, #tpu.memory_space<vmem>>, vector<32x32xf32>
    %cst = arith.constant dense<0.000000e+00> : vector<32x64xf32>
    %3 = tpu.matmul %2, %1, %cst {dimension_numbers = #tpu.dot_dimension_numbers<[1], [0], [0], [1], [0, 0, 1, 1], [], []>} : vector<32x32xf32>, vector<32x64xf32>, vector<32x64xf32> -> vector<32x64xf32>
    %c0_4 = arith.constant 0 : index
    %c0_5 = arith.constant 0 : index
    %4 = vector.load %arg7[%c0_4, %c0_5] : memref<32x1xf32, #tpu.memory_space<vmem>>, vector<32x1xf32>
    %5 = vector.broadcast %4 : vector<32x1xf32> to vector<32x64xf32>
    %6 = arith.addf %3, %5 : vector<32x64xf32>
    %c0_6 = arith.constant 0 : index
    %c0_7 = arith.constant 0 : index
    %c0_8 = arith.constant 0 : index
    %7 = vector.load %arg3[%c0_6, %c0_7, %c0_8] : memref<1x16x32xf32, #tpu.memory_space<vmem>>, vector<1x16x32xf32>
    %8 = vector.shape_cast %7 : vector<1x16x32xf32> to vector<16x32xf32>
    %cst_9 = arith.constant dense<0.000000e+00> : vector<16x64xf32>
    %9 = tpu.matmul %8, %6, %cst_9 {dimension_numbers = #tpu.dot_dimension_numbers<[1], [0], [0], [1], [0, 0, 1, 1], [], []>} : vector<16x32xf32>, vector<32x64xf32>, vector<16x64xf32> -> vector<16x64xf32>
    %cst_10 = arith.constant dense<0xFF800000> : vector<64xf32>
    %10 = vector.multi_reduction <maximumf>, %9, %cst_10 [0] : vector<16x64xf32> to vector<64xf32>
    %11 = vector.shape_cast %10 : vector<64xf32> to vector<1x64xf32>
    %12 = vector.broadcast %11 : vector<1x64xf32> to vector<16x64xf32>
    %13 = arith.subf %9, %12 : vector<16x64xf32>
    %14 = math.exp %13 : vector<16x64xf32>
    %c0_11 = arith.constant 0 : index
    %c0_12 = arith.constant 0 : index
    %15 = vector.load %arg5[%c0_11, %c0_12] : memref<16x16xf32, #tpu.memory_space<vmem>>, vector<16x16xf32>
    %cst_13 = arith.constant dense<0.000000e+00> : vector<16x64xf32>
    %16 = tpu.matmul %15, %14, %cst_13 {dimension_numbers = #tpu.dot_dimension_numbers<[1], [0], [0], [1], [0, 0, 1, 1], [], []>} : vector<16x16xf32>, vector<16x64xf32>, vector<16x64xf32> -> vector<16x64xf32>
    %17 = tpu.reciprocal %16 : vector<16x64xf32> -> vector<16x64xf32>
    %18 = arith.mulf %14, %17 : vector<16x64xf32>
    %c0_14 = arith.constant 0 : index
    %c0_15 = arith.constant 0 : index
    %c0_16 = arith.constant 0 : index
    %19 = vector.load %arg4[%c0_14, %c0_15, %c0_16] : memref<1x32x16xf32, #tpu.memory_space<vmem>>, vector<1x32x16xf32>
    %20 = vector.shape_cast %19 : vector<1x32x16xf32> to vector<32x16xf32>
    %cst_17 = arith.constant dense<0.000000e+00> : vector<32x64xf32>
    %21 = tpu.matmul %20, %18, %cst_17 {dimension_numbers = #tpu.dot_dimension_numbers<[1], [0], [0], [1], [0, 0, 1, 1], [], []>} : vector<32x16xf32>, vector<16x64xf32>, vector<32x64xf32> -> vector<32x64xf32>
    %c0_18 = arith.constant 0 : index
    %c0_19 = arith.constant 0 : index
    %22 = vector.load %arg8[%c0_18, %c0_19] : memref<32x32xf32, #tpu.memory_space<vmem>>, vector<32x32xf32>
    %cst_20 = arith.constant dense<0.000000e+00> : vector<32x64xf32>
    %23 = tpu.matmul %22, %21, %cst_20 {dimension_numbers = #tpu.dot_dimension_numbers<[1], [0], [0], [1], [0, 0, 1, 1], [], []>} : vector<32x32xf32>, vector<32x64xf32>, vector<32x64xf32> -> vector<32x64xf32>
    %c0_21 = arith.constant 0 : index
    %c0_22 = arith.constant 0 : index
    %24 = vector.load %arg9[%c0_21, %c0_22] : memref<32x1xf32, #tpu.memory_space<vmem>>, vector<32x1xf32>
    %25 = vector.broadcast %24 : vector<32x1xf32> to vector<32x64xf32>
    %26 = arith.addf %23, %25 : vector<32x64xf32>
    %c0_23 = arith.constant 0 : index
    %c0_24 = arith.constant 0 : index
    %c0_25 = arith.constant 0 : index
    %27 = vector.load %arg10[%c0_23, %c0_24, %c0_25] : memref<1x32x64xf32, #tpu.memory_space<vmem>>, vector<1x32x64xf32>
    %28 = vector.shape_cast %27 : vector<1x32x64xf32> to vector<32x64xf32>
    %29 = vector.shape_cast %26 : vector<32x64xf32> to vector<1x32x64xf32>
    tpu.vector_store %arg10[%c0_23, %c0_24, %c0_25], %29 {strides = array<i32>} : memref<1x32x64xf32, #tpu.memory_space<vmem>>, vector<1x32x64xf32>,
    return
  }
  func.func @transform_0(%arg0: i32, %arg1: i32) -> (i32, i32, i32) {
    %c0_i32 = arith.constant 0 : i32
    %c0_i32_0 = arith.constant 0 : i32
    return %arg0, %c0_i32, %arg1 : i32, i32, i32
  }
  func.func @transform_1(%arg0: i32, %arg1: i32) -> (i32, i32, i32) {
    %c0_i32 = arith.constant 0 : i32
    %c0_i32_0 = arith.constant 0 : i32
    %c0_i32_1 = arith.constant 0 : i32
    return %arg0, %c0_i32, %c0_i32_0 : i32, i32, i32
  }
  func.func @transform_2(%arg0: i32, %arg1: i32) -> (i32, i32, i32) {
    %c0_i32 = arith.constant 0 : i32
    %c0_i32_0 = arith.constant 0 : i32
    %c0_i32_1 = arith.constant 0 : i32
    return %arg0, %c0_i32, %c0_i32_0 : i32, i32, i32
  }
  func.func @transform_3(%arg0: i32, %arg1: i32) -> (i32, i32) {
    %c0_i32 = arith.constant 0 : i32
    %c0_i32_0 = arith.constant 0 : i32
    %c0_i32_1 = arith.constant 0 : i32
    return %c0_i32, %c0_i32_0 : i32, i32
  }
  func.func @transform_4(%arg0: i32, %arg1: i32) -> (i32, i32) {
    %c0_i32 = arith.constant 0 : i32
    %c0_i32_0 = arith.constant 0 : i32
    %c0_i32_1 = arith.constant 0 : i32
    return %c0_i32, %c0_i32_0 : i32, i32
  }
  func.func @transform_5(%arg0: i32, %arg1: i32) -> (i32, i32) {
    %c0_i32 = arith.constant 0 : i32
    %c0_i32_0 = arith.constant 0 : i32
    %c0_i32_1 = arith.constant 0 : i32
    return %c0_i32, %c0_i32_0 : i32, i32
  }
  func.func @transform_6(%arg0: i32, %arg1: i32) -> (i32, i32) {
    %c0_i32 = arith.constant 0 : i32
    %c0_i32_0 = arith.constant 0 : i32
    %c0_i32_1 = arith.constant 0 : i32
    return %c0_i32, %c0_i32_0 : i32, i32
  }
  func.func @transform_7(%arg0: i32, %arg1: i32) -> (i32, i32) {
    %c0_i32 = arith.constant 0 : i32
    %c0_i32_0 = arith.constant 0 : i32
    %c0_i32_1 = arith.constant 0 : i32
    return %c0_i32, %c0_i32_0 : i32, i32
  }
  func.func @transform_8(%arg0: i32, %arg1: i32) -> (i32, i32, i32) {
    %c0_i32 = arith.constant 0 : i32
    %c0_i32_0 = arith.constant 0 : i32
    return %arg0, %c0_i32, %arg1 : i32, i32, i32
  }
}

</mosaic_0001>

<bundles_post_ra>
// kernel: attention_cross_forward.1
= control target key start
LH: loop header
LB: loop body
LE: loop exit
PB: predicated region body
PF: predicated region fallthrough
CT: control target
= control target key end

     0   :  { %s926_s27 = smov 0   ;;  %s928_s28 = smov 0   ;;  %s1050_s0 = inlined_call_operand.vmem [shape: f32[2,32,64], index: 0, kind: input, shape index: {}]   ;;  %s1051_s1 = inlined_call_operand.vmem [shape: f32[2,16,32], index: 1, kind: input, shape index: {}]   ;;  %s1052_s2 = inlined_call_operand.vmem [shape: f32[2,32,16], index: 2, kind: input, shape index: {}]   ;;  %s1053_s3 = inlined_call_operand.vmem [shape: f32[16,16], index: 3, kind: input, shape index: {}]   ;;  %s1054_s4 = inlined_call_operand.vmem [shape: f32[32,32], index: 4, kind: input, shape index: {}]   ;;  %s1055_s5 = inlined_call_operand.vmem [shape: f32[32,1], index: 5, kind: input, shape index: {}]   ;;  %s1056_s6 = inlined_call_operand.vmem [shape: f32[32,32], index: 6, kind: input, shape index: {}]   ;;  %s1057_s7 = inlined_call_operand.vmem [shape: f32[32,1], index: 7, kind: input, shape index: {}]   ;;  %s1058_s8 = inlined_call_operand.vmem [shape: f32[2,32,64], index: 8, kind: output, shape index: {}]  }
   0x1   :  { %s930_s29 = smov 0  }
   0x2 LB: > { %s30_s30 = sadd.s32 1, %s874_s28  ;;  %p789_p0 = scmp.ge.s32.totalorder %s878_s29, 1  ;;  %s878_s29 = sphi %s930_s29, %s18_s29   ;;  %s874_s28 = sphi %s928_s28, %s1060_s28   ;;  %s870_s27 = sphi %s926_s27, %s1059_s27  }
   0x3   : > { %p32_p1 = scmp.ge.s32.totalorder %s30_s30, 2  ;;  %p301_p2 = scmp.lt.s32.totalorder %s878_s29, 3 }
   0x5   : > { %s1062_s30 = smov (%p32_p1, %s30_s30), 0  ;;  %p302_p3 = pnand %p789_p0, %p301_p2 }
   0x6   : > { %p351_p4 = scmp.lt.s32.totalorder (!%p302_p3), %s870_s27, 1 }
   0x7   : > { %305 = sbr.rel (%p302_p3) target bundleno = 824 (0x338), region = 52 }
   0xc   : > { %v386_v0 = vld [vmem:[%s1055_s5 + $0x8] sm:$0xff]  ;;  %v880_v1 = vmov 0   ;;  %v388_v2 = vld [vmem:[%s1055_s5 + $0x18] sm:$0xff]  ;;  %s1064_s27 = smov (!%p351_p4, %s870_s27), 1  ;;  %v385_v5 = vld [vmem:[%s1055_s5] sm:$0xff]  ;;  %vm409_vm0 = vcmask 261120  }
   0xd   : > { %846 = vset.pattern.permute.xlu1 %v880_v1  ;;  %845 = vset.pattern.permute.xlu0 %v880_v1  ;;  %s953_s13 = sshll.u32 %s1064_s27, 5  ;;  %v387_v6 = vld [vmem:[%s1055_s5 + $0x10] sm:$0xff]  ;;  %v381_v9 = vld [vmem:[%s1054_s4] sm:$0xff]  ;;  %v612_v11 = vld [vmem:[%s1057_s7 + $0x18] sm:$0xff]  ;;  %vm482_vm1 = vcmask 523264   ;;  %vm500_vm2 = vcmask 130048  }
   0xe   : > { %396 = vperm.xlu1 %846, %v386_v0   ;;  %406 = vperm.xlu0 %845, %v388_v2   ;;  %s358_s16 = scalar_lea.vmem %s1050_s0, %s953_s13  ;;  %v611_v10 = vld [vmem:[%s1057_s7 + $0x10] sm:$0xff]  ;;  %v382_v12 = vld [vmem:[%s1054_s4 + $0x8] sm:$0xff]  ;;  %v384_v14 = vld [vmem:[%s1054_s4 + $0x18] sm:$0xff]  ;;  %s368_s25 = scalar_lea.vmem %s1052_s2, %s953_s13 }
   0xf   : > { %847 = vset.pattern.permute.xlu2 %v880_v1  ;;  %v380_v3 = vld [vmem:[%s358_s16 + $0x18] sm:$0xff]  ;;  %v379_v4 = vld [vmem:[%s358_s16 + $0x10] sm:$0xff]  ;;  %v378_v7 = vld [vmem:[%s358_s16 + $0x8] sm:$0xff]  ;;  %s376_s22 = scalar_lea.vmem %s1058_s8, %s953_s13 }
  0x10   : > { %434 = vmatpush.msra.mxu0 %v380_v3  ;;  %v377_v8 = vld [vmem:[%s358_s16] sm:$0xff]  ;;  %v383_v13 = vld [vmem:[%s1054_s4 + $0x10] sm:$0xff]  ;;  %s817_s16 = sshll.u32 %s1064_s27, 4  ;;  %v499_v47 = vld [vmem:[%s1053_s3 + $0x8] sm:$0xff] }
  0x11   : > { %s363_s19 = scalar_lea.vmem %s1051_s1, %s817_s16  ;;  %v498_v45 = vld [vmem:[%s1053_s3] sm:$0xff] }
  0x12   : > { %435 = vmatpush.msra.mxu0 %v379_v4  ;;  %v451_v27 = vld [vmem:[%s363_s19] sm:$0xff]  ;;  %v452_v28 = vld [vmem:[%s363_s19 + $0x8] sm:$0xff] }
  0x14   : > { %436 = vmatpush.msra.mxu0 %v378_v7 }
  0x16   : > { %391 = vperm.xlu1 %846, %v385_v5   ;;  %401 = vperm.xlu0 %845, %v387_v6  }
  0x17   : > { %437 = vmatpush.msra.mxu0 %v377_v8  ;;  %v560_v8 = vld [vmem:[%s368_s25] sm:$0xff] }
  0x18   : > { %798 = vmatmul.msk.f32.vlgmr.msra.gmra.mxu0 %vm409_vm0, %v381_v9  ;;  %v561_v9 = vld [vmem:[%s368_s25 + $0x8] sm:$0xff] }
  0x1e   : > { %625 = vperm.xlu0 %845, %v611_v10   ;;  %630 = vperm.xlu1 %846, %v612_v11   ;;  %v562_v10 = vld [vmem:[%s368_s25 + $0x10] sm:$0xff]  ;;  %v563_v11 = vld [vmem:[%s368_s25 + $0x18] sm:$0xff] }
  0x20   : > { %799 = vmatmul.msk.f32.gmra.mxu0 %vm409_vm0, %v382_v12 }
  0x28   : > { %800 = vmatmul.msk.f32.gmra.mxu0 %vm409_vm0, %v383_v13 }
  0x30   : > { %801 = vmatmul.msk.f32.gmra.mxu0 %vm409_vm0, %v384_v14 }
  0x80   : > { %v407_v17 = vpop.permute.xlu0 %406  ;;  %v397_v19 = vpop.permute.xlu1 %396 }
  0x88   : > { %v402_v22 = vpop.permute.xlu0 %401  ;;  %v392_v24 = vpop.permute.xlu1 %391 }
  0x95   : > { %v439_v15 = vpop.f32.mrf.mxu0 }
  0x96   : > { %v440_v26 = vadd.f32 %v439_v15, %v392_v24 }
  0x9d   : > { %v442_v16 = vpop.f32.mrf.mxu0 }
  0x9e   : > { %v443_v25 = vadd.f32 %v442_v16, %v397_v19  ;;  %v609_v16 = vld [vmem:[%s1057_s7] sm:$0xff]  ;;  %v606_v19 = vld [vmem:[%s1056_s6 + $0x8] sm:$0xff] }
  0x9f   : > { %615 = vperm.xlu2 %847, %v609_v16  }
  0xa5   : > { %v445_v18 = vpop.f32.mrf.mxu0 }
  0xa6   : > { %v446_v23 = vadd.f32 %v445_v18, %v402_v22  ;;  %v610_v18 = vld [vmem:[%s1057_s7 + $0x8] sm:$0xff] }
  0xa7   : > { %620 = vperm.xlu2 %847, %v610_v18  }
  0xad   : > { %v448_v20 = vpop.f32.mrf.mxu0 }
  0xae   : > { %v449_v21 = vadd.f32 %v448_v20, %v407_v17  ;;  %v605_v17 = vld [vmem:[%s1056_s6] sm:$0xff]  ;;  %v607_v20 = vld [vmem:[%s1056_s6 + $0x10] sm:$0xff] }
  0xb0   : > { %471 = vmatpush.msra.mxu1 %v449_v21  ;;  %v608_v21 = vld [vmem:[%s1056_s6 + $0x18] sm:$0xff] }
  0xb2   : > { %472 = vmatpush.msra.mxu1 %v446_v23 }
  0xb4   : > { %473 = vmatpush.msra.mxu1 %v443_v25 }
  0xb6   : > { %474 = vmatpush.msra.mxu1 %v440_v26 }
  0xb7   : > { %802 = vmatmul.msk.f32.vlgmr.msra.gmra.mxu1 %vm409_vm0, %v451_v27 }
  0xbf   : > { %803 = vmatmul.msk.f32.gmra.mxu1 %vm409_vm0, %v452_v28  ;;  %v626_v28 = vpop.permute.xlu0 %625 }
  0xf9   : > { %v616_v22 = vpop.permute.xlu2 %615 }
 0x101   : > { %v621_v25 = vpop.permute.xlu2 %620 }
 0x134   : > { %v476_v29 = vpop.f32.mrf.mxu1 }
 0x135   : > { %v483_v31 = vsel %vm482_vm1, %v476_v29, -inf }
 0x13c   : > { %v479_v30 = vpop.f32.mrf.mxu1 }
 0x13d   : > { %v484_v32 = vsel %vm482_vm1, %v479_v30, -inf }
 0x13e   : > { %v485_v33 = vmax.f32 %v483_v31, %v484_v32  ;;  %v631_v31 = vpop.permute.xlu1 %630 }
 0x140   : > { %v486_v34 = vrot.slane %v485_v33, 4 }
 0x142   : > { %v487_v35 = vmax.f32 %v485_v33, %v486_v34 }
 0x144   : > { %v488_v36 = vrot.slane %v487_v35, 2 }
 0x146   : > { %v489_v37 = vmax.f32 %v487_v35, %v488_v36 }
 0x148   : > { %v490_v38 = vrot.slane %v489_v37, 1 }
 0x14a   : > { %v491_v39 = vmax.f32 %v489_v37, %v490_v38 }
 0x14c   : > { %v492_v40 = vsub.f32 %v476_v29, %v491_v39  ;;  %v493_v41 = vsub.f32 %v479_v30, %v491_v39 }
 0x14e   : > { %v494_v42 = vmul.f32 1.442695, %v492_v40  ;;  %v496_v43 = vmul.f32 1.442695, %v493_v41 }
 0x150   : > { %848 = vpow2.f32 %v496_v43 }
 0x151   : > { %850 = vpow2.f32 %v494_v42 }
 0x156   : > { %v849_v44 = vpop.eup %848 }
 0x157   : > { %521 = vmatpush.msrb.mxu1 %v849_v44  ;;  %v851_v46 = vpop.eup %850 }
 0x159   : > { %522 = vmatpush.msrb.mxu1 %v851_v46 }
 0x15a   : > { %804 = vmatmul.msk.f32.vlgmr.msrb.gmra.mxu1 %vm500_vm2, %v498_v45 }
 0x162   : > { %805 = vmatmul.msk.f32.gmra.mxu1 %vm500_vm2, %v499_v47 }
 0x1d7   : > { %v524_v48 = vpop.f32.mrf.mxu1 }
 0x1d8   : > { %852 = vrcp.f32 %v524_v48  ;;  %vm535_vm4 = vweird.f32 %v524_v48  ;;  %v541_v59 = vand.u32 2147483648, %v524_v48  ;;  %v539_v62 = vand.u32 2147483647, %v524_v48 }
 0x1da   : > { %v542_v2 = vor.u32 1.1754944e-38, %v541_v59  ;;  %vm540_vm10 = vcmp.eq.f32.partialorder %v539_v62, 8.507059e+37 }
 0x1de   : > { %v853_v49 = vpop.eup %852 }
 0x1df   : > { %v531_v50 = vmul.f32 %v853_v49, %v524_v48  ;;  %v527_v51 = vpop.f32.mrf.mxu1  ;;  %vm536_vm3 = vweird.f32 %v853_v49 }
 0x1e0   : > { %854 = vrcp.f32 %v527_v51  ;;  %v555_v58 = vand.u32 2147483648, %v527_v51  ;;  %v553_v61 = vand.u32 2147483647, %v527_v51  ;;  %vm537_vm6 = vmor %vm535_vm4, %vm536_vm3  ;;  %vm549_vm7 = vweird.f32 %v527_v51 }
 0x1e1   : > { %v532_v52 = vsub.f32 1.0, %v531_v50 }
 0x1e2   : > { %v556_v1 = vor.u32 1.1754944e-38, %v555_v58  ;;  %vm554_vm9 = vcmp.eq.f32.partialorder %v553_v61, 8.507059e+37 }
 0x1e3   : > { %v533_v53 = vmul.f32 %v853_v49, %v532_v52 }
 0x1e5   : > { %v534_v57 = vadd.f32 %v853_v49, %v533_v53 }
 0x1e6   : > { %v855_v54 = vpop.eup %854 }
 0x1e7   : > { %v545_v55 = vmul.f32 %v855_v54, %v527_v51  ;;  %vm550_vm5 = vweird.f32 %v855_v54  ;;  %v538_v0 = vsel %vm537_vm6, %v853_v49, %v534_v57 }
 0x1e8   : > { %vm551_vm8 = vmor %vm549_vm7, %vm550_vm5  ;;  %v543_v5 = vsel %vm540_vm10, %v542_v2, %v538_v0 }
 0x1e9   : > { %v546_v56 = vsub.f32 1.0, %v545_v55  ;;  %v558_v7 = vmul.f32 %v851_v46, %v543_v5 }
 0x1eb   : > { %v547_v60 = vmul.f32 %v855_v54, %v546_v56 }
 0x1ed   : > { %v548_v63 = vadd.f32 %v855_v54, %v547_v60 }
 0x1ef   : > { %v552_v3 = vsel %vm551_vm8, %v855_v54, %v548_v63 }
 0x1f0   : > { %v557_v4 = vsel %vm554_vm9, %v556_v1, %v552_v3 }
 0x1f1   : > { %v559_v6 = vmul.f32 %v849_v44, %v557_v4 }
 0x1f3   : > { %590 = vmatpush.msra.mxu3 %v559_v6 }
 0x1f5   : > { %591 = vmatpush.msra.mxu3 %v558_v7 }
 0x1f6   : > { %806 = vmatmul.msk.f32.vlgmr.msra.gmra.mxu3 %vm500_vm2, %v560_v8 }
 0x1fe   : > { %807 = vmatmul.msk.f32.gmra.mxu3 %vm500_vm2, %v561_v9 }
 0x206   : > { %808 = vmatmul.msk.f32.gmra.mxu3 %vm500_vm2, %v562_v10 }
 0x20e   : > { %809 = vmatmul.msk.f32.gmra.mxu3 %vm500_vm2, %v563_v11 }
 0x279   : > { %v593_v12 = vpop.f32.mrf.mxu3 }
 0x281   : > { %v596_v13 = vpop.f32.mrf.mxu3 }
 0x289   : > { %v599_v14 = vpop.f32.mrf.mxu3 }
 0x291   : > { %v602_v15 = vpop.f32.mrf.mxu3 }
 0x292   : > { %657 = vmatpush.msra.mxu2 %v602_v15 }
 0x294   : > { %658 = vmatpush.msra.mxu2 %v599_v14 }
 0x296   : > { %659 = vmatpush.msra.mxu2 %v596_v13 }
 0x298   : > { %660 = vmatpush.msra.mxu2 %v593_v12 }
 0x299   : > { %810 = vmatmul.msk.f32.vlgmr.msra.gmra.mxu2 %vm409_vm0, %v605_v17 }
 0x2a1   : > { %811 = vmatmul.msk.f32.gmra.mxu2 %vm409_vm0, %v606_v19 }
 0x2a9   : > { %812 = vmatmul.msk.f32.gmra.mxu2 %vm409_vm0, %v607_v20 }
 0x2b1   : > { %813 = vmatmul.msk.f32.gmra.mxu2 %vm409_vm0, %v608_v21 }
 0x31c   : > { %v662_v23 = vpop.f32.mrf.mxu2 }
 0x31d   : > { %v663_v24 = vadd.f32 %v662_v23, %v616_v22 }
 0x31f   : > { %674 = vst.msk [vmem:[%s376_s22] sm:$0xff] %vm482_vm1, %v663_v24 }
 0x324   : > { %v665_v26 = vpop.f32.mrf.mxu2 }
 0x325   : > { %v666_v27 = vadd.f32 %v665_v26, %v621_v25 }
 0x327   : > { %675 = vst.msk [vmem:[%s376_s22 + $0x8] sm:$0xff] %vm482_vm1, %v666_v27 }
 0x32c   : > { %v668_v29 = vpop.f32.mrf.mxu2 }
 0x32d   : > { %v669_v30 = vadd.f32 %v668_v29, %v626_v28 }
 0x32f   : > { %676 = vst.msk [vmem:[%s376_s22 + $0x10] sm:$0xff] %vm482_vm1, %v669_v30 }
 0x334   : > { %v671_v32 = vpop.f32.mrf.mxu2 }
 0x335   : > { %v672_v33 = vadd.f32 %v671_v32, %v631_v31 }
 0x337   : > { %677 = vst.msk [vmem:[%s376_s22 + $0x18] sm:$0xff] %vm482_vm1, %v672_v33 }
 0x338 PF: > { %s18_s29 = sadd.s32 1, %s878_s29   ;;  %s1059_s27 = smov %s874_s28 }
 0x339   : > { %p15_p5 = scmp.ge.s32.totalorder %s18_s29, 4   ;;  %s1060_s28 = smov %s1062_s30 }
 0x33b   :  { %17 = sbr.rel (!%p15_p5) target bundleno = 2 (0x2), region = 88 }

</bundles_post_ra>
